<compile_context>
chip_gen: v5e
topology: v5e:2x2
jax: 0.10.0
libtpu: 0.0.40
codegen_flags: <defaults>
</compile_context>

<pallas_src>
import math

import jax
import jax.numpy as jnp
import numpy as np
from jax import lax
from jax.experimental import pallas as pl
from jax.experimental.pallas import tpu as pltpu

SOFTMAX_KERNEL_EPS = 1e-4  # `eps` default of softmax_kernel in the reference


# ---------------------------------------------------------------------------
# Pallas kernels
# ---------------------------------------------------------------------------
def _k_stats_kernel(k_ref, v_ref, proj_ref, lmax_ref, ctx_ref, kcum_ref, vsum_ref):
    """K-side pass for one batch (all heads folded into the block).

    Computes, with a per-batch *local* max stabilizer (rescaled to the global
    max later):
        lmax  = max over (h, l, m) of k @ proj_scaled^T
        e     = exp(kd - k_diag - lmax)                      (H, L, M)
        ctx   = sum_l e[h, l] (x) v[h, l]                    (H, M, D)
        kcum  = sum_l e[h, l]                                (H, 1, M)
        vsum  = sum_l v[h, l]                                (H, 1, D)
    """
    _, H, L, D = k_ref.shape
    dn_sq = float(D) ** -0.5                      # data_normalizer ** 2

    k = k_ref[0].astype(jnp.float32)              # (H, L, D)
    v = v_ref[0].astype(jnp.float32)              # (H, L, D)
    proj = proj_ref[...].astype(jnp.float32)      # (M, D), already * D**-0.25

    # One (H*L, D) x (D, M) matmul per step — proj is shared across heads.
    k2 = k.reshape(H * L, D)
    kd = lax.dot_general(k2, proj, (((1,), (1,)), ((), ())),
                         preferred_element_type=jnp.float32)   # (H*L, M)
    k_diag = jnp.sum(k2 * k2, axis=-1, keepdims=True) * (0.5 * dn_sq)
    lmax = jnp.max(kd)                                         # per-batch max
    e = jnp.exp(kd - k_diag - lmax).reshape(H, L, M := kd.shape[-1])

    lmax_ref[...] = lmax.reshape(1, 1, 1)
    ctx_ref[0] = jnp.einsum('hlm,hld->hmd', e, v,
                            preferred_element_type=jnp.float32)   # (H, M, D)
    kcum_ref[0] = jnp.sum(e, axis=1, keepdims=True)               # (H, 1, M)
    vsum_ref[0] = jnp.sum(v, axis=1, keepdims=True)               # (H, 1, D)


def _attention_kernel(scale_ref, q_ref, ctx_ref, kcum_ref, vsum_ref, proj_ref, o_ref):
    """Q-side pass + linear attention for one batch.

    scale_ref (SMEM, shape (B,)) holds ratio * exp(local_max_b - global_max),
    which converts the pass-1 local statistics into the exact
    softmax_kernel(is_query=False) statistics under the GLOBAL max stabilizer.
    """
    _, H, L, D = q_ref.shape
    M = proj_ref.shape[0]
    dn_sq = float(D) ** -0.5
    ratio = float(M) ** -0.5
    eps = SOFTMAX_KERNEL_EPS

    b = pl.program_id(0)
    scale = scale_ref[b]                                   # SMEM scalar

    q = q_ref[0].astype(jnp.float32)                       # (H, L, D)
    proj = proj_ref[...].astype(jnp.float32)               # (M, D)

    # softmax_kernel(q, is_query=True): single (H*L, D) x (D, M) matmul.
    q2 = q.reshape(H * L, D)
    qd = lax.dot_general(q2, proj, (((1,), (1,)), ((), ())),
                         preferred_element_type=jnp.float32)   # (H*L, M)
    q_diag = jnp.sum(q2 * q2, axis=-1, keepdims=True) * (0.5 * dn_sq)
    q_prime = ratio * (jnp.exp(qd - q_diag - jnp.max(qd, axis=-1, keepdims=True))
                       + eps)
    q_prime = q_prime.reshape(H, L, M)

    # Finalize the k-side statistics (rescale local -> global max, add eps term).
    context = scale * ctx_ref[0] + (ratio * eps) * vsum_ref[0]    # (H, M, D)
    k_cumsum = scale * kcum_ref[0] + (ratio * eps * L)            # (H, 1, M)

    # linear_attention: denominator on the VPU (no MXU matvec / transpose).
    denom = jnp.sum(q_prime * k_cumsum, axis=-1, keepdims=True)   # (H, L, 1)
    out = jnp.einsum('hlm,hmd->hld', q_prime, context,
                     preferred_element_type=jnp.float32)          # (H, L, D)
    o_ref[0] = (out / denom).astype(o_ref.dtype)


# ---------------------------------------------------------------------------
# Wrapper around pallas_call
# ---------------------------------------------------------------------------
def fast_attention_forward(q, k, v, projection_matrix_scaled):
    B, H, L, D = q.shape
    M = projection_matrix_scaled.shape[0]
    ratio = float(M) ** -0.5

    qkv_spec = pl.BlockSpec((1, H, L, D), lambda i: (i, 0, 0, 0))
    proj_spec = pl.BlockSpec((M, D), lambda i: (0, 0))
    params = pltpu.CompilerParams(
        dimension_semantics=("parallel",),
        vmem_limit_bytes=32 * 1024 * 1024)

    # Pass 1: K-side statistics per batch (k @ proj computed exactly once).
    lmax, ctx_local, kcum_local, vsum = pl.pallas_call(
        _k_stats_kernel,
        out_shape=(
            jax.ShapeDtypeStruct((B, 1, 1), jnp.float32),
            jax.ShapeDtypeStruct((B, H, M, D), jnp.float32),
            jax.ShapeDtypeStruct((B, H, 1, M), jnp.float32),
            jax.ShapeDtypeStruct((B, H, 1, D), jnp.float32),
        ),
        grid=(B,),
        in_specs=[qkv_spec, qkv_spec, proj_spec],
        out_specs=(
            pl.BlockSpec((1, 1, 1), lambda i: (i, 0, 0)),
            pl.BlockSpec((1, H, M, D), lambda i: (i, 0, 0, 0)),
            pl.BlockSpec((1, H, 1, M), lambda i: (i, 0, 0, 0)),
            pl.BlockSpec((1, H, 1, D), lambda i: (i, 0, 0, 0)),
        ),
        compiler_params=params,
    )(k, v, projection_matrix_scaled)

    # Tiny glue: global max over (b, h, l, m) and per-batch rescale factor.
    lmax_flat = lmax.reshape(B)
    gmax = jnp.max(lmax_flat)
    scale = (ratio * jnp.exp(lmax_flat - gmax)).astype(jnp.float32)   # (B,)

    # Pass 2: Q features + linear attention; never touches k or v again.
    out = pl.pallas_call(
        _attention_kernel,
        out_shape=jax.ShapeDtypeStruct((B, H, L, D), q.dtype),
        grid=(B,),
        in_specs=[
            pl.BlockSpec(memory_space=pltpu.MemorySpace.SMEM),     # scale (B,)
            qkv_spec,                                              # q
            pl.BlockSpec((1, H, M, D), lambda i: (i, 0, 0, 0)),    # ctx_local
            pl.BlockSpec((1, H, 1, M), lambda i: (i, 0, 0, 0)),    # kcum_local
            pl.BlockSpec((1, H, 1, D), lambda i: (i, 0, 0, 0)),    # vsum
            proj_spec,                                             # proj_scaled
        ],
        out_specs=qkv_spec,
        compiler_params=params,
    )(scale, q, ctx_local, kcum_local, vsum, projection_matrix_scaled)
    return out


# ---------------------------------------------------------------------------
# Deterministic parameter construction (mirrors the PyTorch __init__ shapes)
# ---------------------------------------------------------------------------
def _orthogonal_matrix_chunk(key, cols):
    unstructured = jax.random.normal(key, (cols, cols), jnp.float32)
    q, _ = jnp.linalg.qr(unstructured)
    return q.T


def gaussian_orthogonal_random_matrix(key, nb_rows, nb_columns, scaling=0):
    nb_full_blocks = nb_rows // nb_columns
    keys = jax.random.split(key, nb_full_blocks + 2)
    blocks = [_orthogonal_matrix_chunk(keys[i], nb_columns)
              for i in range(nb_full_blocks)]
    remaining = nb_rows - nb_full_blocks * nb_columns
    if remaining > 0:
        blocks.append(_orthogonal_matrix_chunk(keys[nb_full_blocks],
                                               nb_columns)[:remaining])
    final = jnp.concatenate(blocks, axis=0)
    if scaling == 0:
        multiplier = jnp.linalg.norm(
            jax.random.normal(keys[-1], (nb_rows, nb_columns), jnp.float32), axis=1)
    elif scaling == 1:
        multiplier = math.sqrt(float(nb_columns)) * jnp.ones((nb_rows,), jnp.float32)
    else:
        raise ValueError(f"Invalid scaling {scaling}")
    return jnp.diag(multiplier) @ final


class FastAttentionPallas:
    """Non-causal, non-generalized Performer FastAttention."""

    def __init__(self, heads, dim_heads, nb_features=256, ortho_scaling=0, seed=0):
        self.heads = heads
        self.dim_heads = dim_heads
        self.nb_features = nb_features
        self.ortho_scaling = ortho_scaling
        self._proj_seed = seed
        self._set_projection(seed)
        # TODO(synk): causal path (fast_transformers CUDA causal_product) and the
        # generalized_attention/kmeans path (reads bucket indices from a CSV on
        # disk and references an undefined name `fg`) are not translated.

    def _set_projection(self, seed):
        proj = gaussian_orthogonal_random_matrix(
            jax.random.PRNGKey(seed), self.nb_features, self.dim_heads,
            self.ortho_scaling)
        self.projection_matrix = proj
        # Fold data_normalizer into the projection once per redraw (amortized to
        # ~zero), instead of scaling q/k inside the kernel every call.
        self.projection_matrix_scaled = (
            (float(self.dim_heads) ** -0.25) * proj).astype(jnp.float32)

    def redraw_projection_matrix(self):
        self._proj_seed += 1
        self._set_projection(self._proj_seed)

    def __call__(self, q, k, v):
        return fast_attention_forward(q, k, v, self.projection_matrix_scaled)


class AttentionPallas:
    """Port of the PyTorch `Attention` forward (global-heads path):
       to_q / to_v -> Performer fast attention with k = q -> to_out.
    local_heads defaults to 0 and dropout is identity at inference."""

    def __init__(self, dim, heads=8, dim_head=None, nb_features=256,
                 ortho_scaling=0, qkv_bias=False, attn_out_bias=True, seed=0):
        assert dim % heads == 0, 'dimension must be divisible by number of heads'
        dim_head = dim // heads if dim_head is None else dim_head
        inner_dim = dim_head * heads
        self.heads = heads
        self.dim_head = dim_head

        keys = jax.random.split(jax.random.PRNGKey(seed), 4)
        lim_in = 1.0 / math.sqrt(dim)
        lim_out = 1.0 / math.sqrt(inner_dim)
        self.w_q = jax.random.uniform(keys[0], (dim, inner_dim), jnp.float32,
                                      -lim_in, lim_in)
        self.w_v = jax.random.uniform(keys[1], (dim, inner_dim), jnp.float32,
                                      -lim_in, lim_in)
        self.w_out = jax.random.uniform(keys[2], (inner_dim, dim), jnp.float32,
                                        -lim_out, lim_out)
        self.b_out = (jax.random.uniform(keys[3], (dim,), jnp.float32,
                                         -lim_out, lim_out)
                      if attn_out_bias else None)
        del qkv_bias  # default False in the reference; biases omitted.

        self.fast_attention = FastAttentionPallas(
            heads, dim_head, nb_features, ortho_scaling, seed=seed + 1)

    def __call__(self, x):
        b, n, _ = x.shape
        h, d = self.heads, self.dim_head
        q = x @ self.w_q
        v = x @ self.w_v
        q = q.reshape(b, n, h, d).transpose(0, 2, 1, 3)
        v = v.reshape(b, n, h, d).transpose(0, 2, 1, 3)
        out = self.fast_attention(q, q, v)          # reference calls (q, q, v)
        out = out.transpose(0, 2, 1, 3).reshape(b, n, h * d)
        out = out @ self.w_out
        if self.b_out is not None:
            out = out + self.b_out
        # TODO(synk): aux_loss comes from the broken kmeans/generalized branch in
        # the reference (undefined `fg`, CSV read); returned as 0 here.
        return out, jnp.float32(0.0)


# ---------------------------------------------------------------------------
# Pure-JAX references (for correctness checks)
# ---------------------------------------------------------------------------
def _reference(q, k, v, proj, eps=SOFTMAX_KERNEL_EPS):
    d = q.shape[-1]
    m = proj.shape[0]
    dn = d ** (-0.25)
    ratio = m ** (-0.5)
    qd = jnp.einsum('bhld,md->bhlm', dn * q, proj)
    kd = jnp.einsum('bhld,md->bhlm', dn * k, proj)
    q_diag = jnp.sum(q ** 2, -1, keepdims=True) / 2.0 * dn ** 2
    k_diag = jnp.sum(k ** 2, -1, keepdims=True) / 2.0 * dn ** 2
    qp = ratio * (jnp.exp(qd - q_diag - jnp.max(qd, -1, keepdims=True)) + eps)
    kp = ratio * (jnp.exp(kd - k_diag - jnp.max(kd)) + eps)
    k_cumsum = kp.sum(-2)
    d_inv = 1.0 / jnp.einsum('bhlm,bhm->bhl', qp, k_cumsum)
    context = jnp.einsum('bhlm,bhld->bhmd', kp, v)
    return jnp.einsum('bhmd,bhlm,bhl->bhld', context, qp, d_inv)


def _attention_reference(x, attn):
    b, n, _ = x.shape
    h, d = attn.heads, attn.dim_head
    q = x @ attn.w_q
    v = x @ attn.w_v
    q = q.reshape(b, n, h, d).transpose(0, 2, 1, 3)
    v = v.reshape(b, n, h, d).transpose(0, 2, 1, 3)
    out = _reference(q, q, v, attn.fast_attention.projection_matrix)
    out = out.transpose(0, 2, 1, 3).reshape(b, n, h * d)
    out = out @ attn.w_out
    if attn.b_out is not None:
        out = out + attn.b_out
    return out


if __name__ == "__main__":
    B, N, DIM, HEADS = 2, 8, 64, 2          # dim_head = 32
    DIM_HEAD = DIM // HEADS
    NB_FEATURES = 256                        # hardcoded in FastAttention.__init__

    key = jax.random.PRNGKey(0)
    kx, kq, kk, kv = jax.random.split(key, 4)

    # --- fast-attention core check (q, k, v given directly) ---
    q = jax.random.normal(kq, (B, HEADS, N, DIM_HEAD), jnp.float32)
    k = jax.random.normal(kk, (B, HEADS, N, DIM_HEAD), jnp.float32)
    v = jax.random.normal(kv, (B, HEADS, N, DIM_HEAD), jnp.float32)
    fast_attn = FastAttentionPallas(HEADS, DIM_HEAD, NB_FEATURES, seed=0)
    fast_attn.redraw_projection_matrix()     # exercise redraw bookkeeping
    out_core = jax.block_until_ready(fast_attn(q, k, v))
    ref_core = _reference(q, k, v, fast_attn.projection_matrix)
    np.testing.assert_allclose(np.asarray(out_core), np.asarray(ref_core),
                               rtol=2e-4, atol=2e-5)

    # --- full Attention forward: to_q/to_v -> performer attention -> to_out ---
    x = jax.random.normal(kx, (B, N, DIM), jnp.float32)
    attn = AttentionPallas(DIM, heads=HEADS, nb_features=NB_FEATURES, seed=1)
    out, aux_loss = attn(x)
    out = jax.block_until_ready(out)
    ref = _attention_reference(x, attn)
    np.testing.assert_allclose(np.asarray(out), np.asarray(ref),
                               rtol=2e-4, atol=2e-5)

    print("KERNEL_OK")
</pallas_src>

<mosaic_0001>
module attributes {stable_mosaic.version = 11 : i64} {
  func.func @_k_stats_kernel(%arg0: i32, %arg1: memref<1x2x8x32xf32, #tpu.memory_space<vmem>>, %arg2: memref<1x2x8x32xf32, #tpu.memory_space<vmem>>, %arg3: memref<256x32xf32, #tpu.memory_space<vmem>>, %arg4: memref<1x1x1xf32, #tpu.memory_space<vmem>>, %arg5: memref<1x2x256x32xf32, #tpu.memory_space<vmem>>, %arg6: memref<1x2x1x256xf32, #tpu.memory_space<vmem>>, %arg7: memref<1x2x1x32xf32, #tpu.memory_space<vmem>>) attributes {dimension_semantics = [#tpu.dimension_semantics<parallel>], iteration_bounds = array<i64: 2>, scalar_prefetch = 0 : i64, scratch_operands = 0 : i64, tpu.core_type = #tpu.core_type<tc>, window_params = [{transform_indices = @transform_0, window_bounds = array<i64: 1, 2, 8, 32>}, {transform_indices = @transform_1, window_bounds = array<i64: 1, 2, 8, 32>}, {pipeline_mode = #tpu.pipeline_mode<synchronous>, transform_indices = @transform_2, window_bounds = array<i64: 256, 32>}, {transform_indices = @transform_3, window_bounds = array<i64: 1, 1, 1>}, {transform_indices = @transform_4, window_bounds = array<i64: 1, 2, 256, 32>}, {transform_indices = @transform_5, window_bounds = array<i64: 1, 2, 1, 256>}, {transform_indices = @transform_6, window_bounds = array<i64: 1, 2, 1, 32>}]} {
    %c0 = arith.constant 0 : index
    %c0_0 = arith.constant 0 : index
    %c0_1 = arith.constant 0 : index
    %c0_2 = arith.constant 0 : index
    %0 = vector.load %arg1[%c0, %c0_0, %c0_1, %c0_2] : memref<1x2x8x32xf32, #tpu.memory_space<vmem>>, vector<1x2x8x32xf32>
    %1 = vector.shape_cast %0 : vector<1x2x8x32xf32> to vector<2x8x32xf32>
    %c0_3 = arith.constant 0 : index
    %c0_4 = arith.constant 0 : index
    %c0_5 = arith.constant 0 : index
    %c0_6 = arith.constant 0 : index
    %2 = vector.load %arg2[%c0_3, %c0_4, %c0_5, %c0_6] : memref<1x2x8x32xf32, #tpu.memory_space<vmem>>, vector<1x2x8x32xf32>
    %3 = vector.shape_cast %2 : vector<1x2x8x32xf32> to vector<2x8x32xf32>
    %c0_7 = arith.constant 0 : index
    %c0_8 = arith.constant 0 : index
    %4 = vector.load %arg3[%c0_7, %c0_8] : memref<256x32xf32, #tpu.memory_space<vmem>>, vector<256x32xf32>
    %5 = vector.shape_cast %1 : vector<2x8x32xf32> to vector<16x32xf32>
    %cst = arith.constant dense<0.000000e+00> : vector<16x256xf32>
    %6 = tpu.matmul %5, %4, %cst {dimension_numbers = #tpu.dot_dimension_numbers<[1], [1], [0], [0], [0, 0, 1, 0], [], []>} : vector<16x32xf32>, vector<256x32xf32>, vector<16x256xf32> -> vector<16x256xf32>
    %7 = arith.mulf %5, %5 : vector<16x32xf32>
    %cst_9 = arith.constant dense<0.000000e+00> : vector<16xf32>
    %8 = vector.multi_reduction <add>, %7, %cst_9 [1] : vector<16x32xf32> to vector<16xf32>
    %9 = vector.shape_cast %8 : vector<16xf32> to vector<16x1xf32>
    %cst_10 = arith.constant 0.0883883461 : f32
    %10 = vector.broadcast %cst_10 : f32 to vector<16x1xf32>
    %11 = arith.mulf %9, %10 : vector<16x1xf32>
    %12 = vector.shape_cast %6 : vector<16x256xf32> to vector<1x16x256xf32>
    %cst_11 = arith.constant dense<0xFF800000> : vector<1xf32>
    %13 = vector.multi_reduction <maximumf>, %12, %cst_11 [1, 2] : vector<1x16x256xf32> to vector<1xf32>
    %14 = vector.shape_cast %13 : vector<1xf32> to vector<1x1x1xf32>
    %15 = vector.extract %14[0, 0, 0] : f32 from vector<1x1x1xf32>
    %16 = vector.broadcast %11 : vector<16x1xf32> to vector<16x256xf32>
    %17 = arith.subf %6, %16 : vector<16x256xf32>
    %18 = vector.broadcast %15 : f32 to vector<16x256xf32>
    %19 = arith.subf %17, %18 : vector<16x256xf32>
    %20 = math.exp %19 : vector<16x256xf32>
    %21 = vector.shape_cast %20 : vector<16x256xf32> to vector<2x8x256xf32>
    %22 = vector.broadcast %15 : f32 to vector<1x1x1xf32>
    %c0_12 = arith.constant 0 : index
    %c0_13 = arith.constant 0 : index
    %c0_14 = arith.constant 0 : index
    %23 = vector.load %arg4[%c0_12, %c0_13, %c0_14] : memref<1x1x1xf32, #tpu.memory_space<vmem>>, vector<1x1x1xf32>
    tpu.vector_store %arg4[%c0_12, %c0_13, %c0_14], %22 {strides = array<i32>} : memref<1x1x1xf32, #tpu.memory_space<vmem>>, vector<1x1x1xf32>,
    "tpu.trace_start"() <{level = 10 : i32, message = "hlm,hld->hmd"}> : () -> ()
    %cst_15 = arith.constant dense<0.000000e+00> : vector<2x256x32xf32>
    %24 = tpu.matmul %21, %3, %cst_15 {dimension_numbers = #tpu.dot_dimension_numbers<[1], [1], [2], [2], [0, 0, 0, 2, 1, 2], [0], [0]>} : vector<2x8x256xf32>, vector<2x8x32xf32>, vector<2x256x32xf32> -> vector<2x256x32xf32>
    "tpu.trace_stop"() : () -> ()
    %c0_16 = arith.constant 0 : index
    %c0_17 = arith.constant 0 : index
    %c0_18 = arith.constant 0 : index
    %c0_19 = arith.constant 0 : index
    %25 = vector.load %arg5[%c0_16, %c0_17, %c0_18, %c0_19] : memref<1x2x256x32xf32, #tpu.memory_space<vmem>>, vector<1x2x256x32xf32>
    %26 = vector.shape_cast %25 : vector<1x2x256x32xf32> to vector<2x256x32xf32>
    %27 = vector.shape_cast %24 : vector<2x256x32xf32> to vector<1x2x256x32xf32>
    tpu.vector_store %arg5[%c0_16, %c0_17, %c0_18, %c0_19], %27 {strides = array<i32>} : memref<1x2x256x32xf32, #tpu.memory_space<vmem>>, vector<1x2x256x32xf32>,
    %cst_20 = arith.constant dense<0.000000e+00> : vector<2x256xf32>
    %28 = vector.multi_reduction <add>, %21, %cst_20 [1] : vector<2x8x256xf32> to vector<2x256xf32>
    %29 = vector.shape_cast %28 : vector<2x256xf32> to vector<2x1x256xf32>
    %c0_21 = arith.constant 0 : index
    %c0_22 = arith.constant 0 : index
    %c0_23 = arith.constant 0 : index
    %c0_24 = arith.constant 0 : index
    %30 = vector.load %arg6[%c0_21, %c0_22, %c0_23, %c0_24] : memref<1x2x1x256xf32, #tpu.memory_space<vmem>>, vector<1x2x1x256xf32>
    %31 = vector.shape_cast %30 : vector<1x2x1x256xf32> to vector<2x1x256xf32>
    %32 = vector.shape_cast %29 : vector<2x1x256xf32> to vector<1x2x1x256xf32>
    tpu.vector_store %arg6[%c0_21, %c0_22, %c0_23, %c0_24], %32 {strides = array<i32>} : memref<1x2x1x256xf32, #tpu.memory_space<vmem>>, vector<1x2x1x256xf32>,
    %cst_25 = arith.constant dense<0.000000e+00> : vector<2x32xf32>
    %33 = vector.multi_reduction <add>, %3, %cst_25 [1] : vector<2x8x32xf32> to vector<2x32xf32>
    %34 = vector.shape_cast %33 : vector<2x32xf32> to vector<2x1x32xf32>
    %c0_26 = arith.constant 0 : index
    %c0_27 = arith.constant 0 : index
    %c0_28 = arith.constant 0 : index
    %c0_29 = arith.constant 0 : index
    %35 = vector.load %arg7[%c0_26, %c0_27, %c0_28, %c0_29] : memref<1x2x1x32xf32, #tpu.memory_space<vmem>>, vector<1x2x1x32xf32>
    %36 = vector.shape_cast %35 : vector<1x2x1x32xf32> to vector<2x1x32xf32>
    %37 = vector.shape_cast %34 : vector<2x1x32xf32> to vector<1x2x1x32xf32>
    tpu.vector_store %arg7[%c0_26, %c0_27, %c0_28, %c0_29], %37 {strides = array<i32>} : memref<1x2x1x32xf32, #tpu.memory_space<vmem>>, vector<1x2x1x32xf32>,
    return
  }
  func.func @transform_0(%arg0: i32) -> (i32, i32, i32, i32) {
    %c0_i32 = arith.constant 0 : i32
    %c0_i32_0 = arith.constant 0 : i32
    %c0_i32_1 = arith.constant 0 : i32
    %c0_i32_2 = arith.constant 0 : i32
    return %arg0, %c0_i32, %c0_i32_0, %c0_i32_1 : i32, i32, i32, i32
  }
  func.func @transform_1(%arg0: i32) -> (i32, i32, i32, i32) {
    %c0_i32 = arith.constant 0 : i32
    %c0_i32_0 = arith.constant 0 : i32
    %c0_i32_1 = arith.constant 0 : i32
    %c0_i32_2 = arith.constant 0 : i32
    return %arg0, %c0_i32, %c0_i32_0, %c0_i32_1 : i32, i32, i32, i32
  }
  func.func @transform_2(%arg0: i32) -> (i32, i32) {
    %c0_i32 = arith.constant 0 : i32
    %c0_i32_0 = arith.constant 0 : i32
    %c0_i32_1 = arith.constant 0 : i32
    return %c0_i32, %c0_i32_0 : i32, i32
  }
  func.func @transform_3(%arg0: i32) -> (i32, i32, i32) {
    %c0_i32 = arith.constant 0 : i32
    %c0_i32_0 = arith.constant 0 : i32
    %c0_i32_1 = arith.constant 0 : i32
    return %arg0, %c0_i32, %c0_i32_0 : i32, i32, i32
  }
  func.func @transform_4(%arg0: i32) -> (i32, i32, i32, i32) {
    %c0_i32 = arith.constant 0 : i32
    %c0_i32_0 = arith.constant 0 : i32
    %c0_i32_1 = arith.constant 0 : i32
    %c0_i32_2 = arith.constant 0 : i32
    return %arg0, %c0_i32, %c0_i32_0, %c0_i32_1 : i32, i32, i32, i32
  }
  func.func @transform_5(%arg0: i32) -> (i32, i32, i32, i32) {
    %c0_i32 = arith.constant 0 : i32
    %c0_i32_0 = arith.constant 0 : i32
    %c0_i32_1 = arith.constant 0 : i32
    %c0_i32_2 = arith.constant 0 : i32
    return %arg0, %c0_i32, %c0_i32_0, %c0_i32_1 : i32, i32, i32, i32
  }
  func.func @transform_6(%arg0: i32) -> (i32, i32, i32, i32) {
    %c0_i32 = arith.constant 0 : i32
    %c0_i32_0 = arith.constant 0 : i32
    %c0_i32_1 = arith.constant 0 : i32
    %c0_i32_2 = arith.constant 0 : i32
    return %arg0, %c0_i32, %c0_i32_0, %c0_i32_1 : i32, i32, i32, i32
  }
}

</mosaic_0001>

<bundles_post_ra>
// kernel: tpu_custom_call.1
= control target key start
LH: loop header
LB: loop body
LE: loop exit
PB: predicated region body
PF: predicated region fallthrough
CT: control target
= control target key end

     0   :  { %s2182_s0 = inlined_call_operand.vmem [shape: f32[2,2,8,32], index: 0, kind: input, shape index: {}]   ;;  %s2183_s1 = inlined_call_operand.vmem [shape: f32[2,2,8,32], index: 1, kind: input, shape index: {}]   ;;  %s2184_s2 = inlined_call_operand.vmem [shape: f32[256,32], index: 2, kind: input, shape index: {}]   ;;  %s2185_s3 = inlined_call_operand.vmem [shape: f32[2,1,1], index: 3, kind: output, shape index: {0}]   ;;  %s2186_s4 = inlined_call_operand.vmem [shape: f32[2,2,256,32], index: 4, kind: output, shape index: {1}]   ;;  %s2187_s5 = inlined_call_operand.hbm [shape: f32[2,2,1,256], index: 5, kind: output, shape index: {2}]   ;;  %s2188_s6 = inlined_call_operand.hbm [shape: f32[2,2,1,32], index: 6, kind: output, shape index: {3}]  }
   0x1   :  { %2189 = sst [smem:[#allocation8_spill]] %s2182_s0 }
   0x2   :  { %2190 = sst [smem:[#allocation9_spill]] %s2183_s1 }
   0x3   :  { %12 = vsyncpa [#allocation3], 0 }
   0x4   :  { %14 = vsyncpa [#allocation3 + $0x1], 0 }
   0x5   :  { %15 = vsyncpa [#allocation5], 0 }
   0x6   :  { %17 = vsyncpa [#allocation5 + $0x1], 0  ;;  %s1714_s21 = smov 0   ;;  %s1716_s22 = smov 0  }
   0x7   :  { %s1718_s23 = smov 0   ;;  %s1720_s24 = smov 0  }
   0x8 LB: > { %s1735_s25 = sadd.s32 4294967295, %s1673_s24   ;;  %s1397_s26 = sadd.s32 4294967294, %s1673_s24   ;;  %s1673_s24 = sphi %s1720_s24, %s2198_s24   ;;  %s1669_s23 = sphi %s1718_s23, %s2197_s23   ;;  %s1665_s22 = sphi %s1716_s22, %s2196_s22   ;;  %s1661_s21 = sphi %s1714_s21, %s2195_s21  }
   0x9   : > { %s1739_s27 = sadd.s32 1, %s1673_s24   ;;  %s155_s28 = sadd.s32 1, %s1669_s23 }
   0xa   : > { %s152_s29 = ssub.s32 %s1673_s24, %s1739_s27  ;;  %p165_p0 = scmp.ne.s32.totalorder %s1669_s23, %s1665_s22 }
   0xb   : > { %p153_p1 = scmp.eq.s32.totalorder %s152_s29, 0  ;;  %p166_p2 = scmp.eq.s32.totalorder %s1735_s25, 1 }
   0xc   : > { %p171_p3 = scmp.ne.s32.totalorder %s1665_s22, %s1661_s21  ;;  %p172_p4 = scmp.eq.s32.totalorder %s1397_s26, 1 }
   0xd   : > { %s1750_s30 = scalar_select %p153_p1, %s1669_s23, %s155_s28  }
   0xe   : > { %p1752_p5 = por %p166_p2, %p165_p0  ;;  %p1756_p6 = por %p172_p4, %p171_p3 }
   0xf   : > { %p1400_p7 = scmp.ge.s32.totalorder %s1673_s24, 1  ;;  %p235_p8 = scmp.lt.s32.totalorder %s1673_s24, 3 }
  0x11   : > { %p236_p9 = pnand %p1400_p7, %p235_p8 }
  0x12   : > { %p283_p10 = scmp.lt.s32.totalorder (!%p236_p9), %s1735_s25, 1  ;;  %s2193_s0 = sld [smem:[#allocation8_spill]] (!%p236_p9) }
  0x13   : > { %239 = sbr.rel (%p236_p9) target bundleno = 963 (0x3c3), region = 32  ;;  %s1911_s11 = sand.u32 (!%p236_p9), 1, %s1665_s22  }
  0x14   : > { %s1401_s13 = sshll.u32 (!%p236_p9), %s1911_s11, 2  ;;  %s2194_s1 = sld [smem:[#allocation9_spill]] (!%p236_p9) }
  0x15   : > { %s1914_s14 = scalar_lea.vmem (!%p236_p9), [#allocation2], %s1401_s13  ;;  %s1205_s16 = scalar_lea.sflag (!%p236_p9), [#allocation3], %s1911_s11 }
  0x16   : > { %s1599_s26 = scalar_lea.hbm (!%p236_p9), %s2187_s5, 8 }
  0x18   : > { %v320_v0 = vld [vmem:[%s2184_s2 + $0x78] sm:$0xff]  ;;  %vm337_vm0 = vcmask 261120   ;;  %v319_v2 = vld [vmem:[%s2184_s2 + $0x70] sm:$0xff]  ;;  %v318_v4 = vld [vmem:[%s2184_s2 + $0x68] sm:$0xff]  ;;  %s1834_s15 = scalar_select %p283_p10, %s1735_s25, 1  ;;  %vm525_vm1 = vcmask 0  }
  0x19   : > { %v336_v1 = vld [vmem:[%s2184_s2 + $0xf8] sm:$0xff]  ;;  %1409 = vmatpush.xpose.msk.msra.mxu0 %vm337_vm0, %v320_v0  ;;  %v335_v3 = vld [vmem:[%s2184_s2 + $0xf0] sm:$0xff]  ;;  %v334_v5 = vld [vmem:[%s2184_s2 + $0xe8] sm:$0xff]  ;;  %vm1168_vm2 = vcmask 1040384   ;;  %vm591_vm4 = vcmask 64512  }
  0x1a   : > { %1427 = vmatpush.xpose.msk.msra.mxu1 %vm337_vm0, %v336_v1  ;;  %v317_v6 = vld [vmem:[%s2184_s2 + $0x60] sm:$0xff]  ;;  %v316_v8 = vld [vmem:[%s2184_s2 + $0x58] sm:$0xff]  ;;  %v315_v10 = vld [vmem:[%s2184_s2 + $0x50] sm:$0xff]  ;;  %s1515_s20 = sshll.u32 %s1834_s15, 4  ;;  %s295_s9 = scalar_lea.vmem %s2185_s3, %s1834_s15 }
  0x1b   : > { %v333_v7 = vld [vmem:[%s2184_s2 + $0xe0] sm:$0xff]  ;;  %v332_v9 = vld [vmem:[%s2184_s2 + $0xd8] sm:$0xff]  ;;  %v331_v11 = vld [vmem:[%s2184_s2 + $0xd0] sm:$0xff]  ;;  %s287_s12 = scalar_lea.vmem %s2193_s0, %s1515_s20  ;;  %s292_s18 = scalar_lea.vmem %s2194_s1, %s1515_s20 }
  0x1c   : > { %v314_v12 = vld [vmem:[%s2184_s2 + $0x48] sm:$0xff]  ;;  %v313_v14 = vld [vmem:[%s2184_s2 + $0x40] sm:$0xff]  ;;  %v312_v16 = vld [vmem:[%s2184_s2 + $0x38] sm:$0xff]  ;;  %s1517_s20 = sshll.u32 %s1834_s15, 9  ;;  %s1511_s15 = sshll.u32 %s1735_s25, 2 }
  0x1d   : > { %1410 = vmatpush.xpose.msk.msra.mxu0 %vm337_vm0, %v319_v2  ;;  %v330_v13 = vld [vmem:[%s2184_s2 + $0xc8] sm:$0xff]  ;;  %v329_v15 = vld [vmem:[%s2184_s2 + $0xc0] sm:$0xff]  ;;  %v328_v17 = vld [vmem:[%s2184_s2 + $0xb8] sm:$0xff]  ;;  %s1966_s28 = scalar_lea.vmem %s2186_s4, %s1517_s20 }
  0x1e   : > { %1428 = vmatpush.xpose.msk.msra.mxu1 %vm337_vm0, %v335_v3  ;;  %v311_v18 = vld [vmem:[%s2184_s2 + $0x30] sm:$0xff]  ;;  %v310_v20 = vld [vmem:[%s2184_s2 + $0x28] sm:$0xff]  ;;  %v309_v24 = vld [vmem:[%s2184_s2 + $0x20] sm:$0xff] }
  0x1f   : > { %v327_v19 = vld [vmem:[%s2184_s2 + $0xb0] sm:$0xff]  ;;  %v326_v21 = vld [vmem:[%s2184_s2 + $0xa8] sm:$0xff]  ;;  %v325_v25 = vld [vmem:[%s2184_s2 + $0xa0] sm:$0xff] }
  0x20   : > { %v302_v22 = vld [vmem:[%s287_s12 + $0x8] sm:$0xff]  ;;  %v308_v27 = vld [vmem:[%s2184_s2 + $0x18] sm:$0xff]  ;;  %v307_v29 = vld [vmem:[%s2184_s2 + $0x10] sm:$0xff] }
  0x21   : > { %1411 = vmatpush.xpose.msk.msra.mxu0 %vm337_vm0, %v318_v4  ;;  %v487_v23 = vmul.f32 %v302_v22, %v302_v22  ;;  %v324_v28 = vld [vmem:[%s2184_s2 + $0x98] sm:$0xff]  ;;  %v323_v30 = vld [vmem:[%s2184_s2 + $0x90] sm:$0xff]  ;;  %v306_v31 = vld [vmem:[%s2184_s2 + $0x8] sm:$0xff] }
  0x22   : > { %1429 = vmatpush.xpose.msk.msra.mxu1 %vm337_vm0, %v334_v5  ;;  %v322_v32 = vld [vmem:[%s2184_s2 + $0x88] sm:$0xff]  ;;  %v305_v33 = vld [vmem:[%s2184_s2] sm:$0xff] }
  0x23   : > { %v491_v26 = vsel %vm337_vm0, %v487_v23, 0.0  ;;  %v321_v34 = vld [vmem:[%s2184_s2 + $0x80] sm:$0xff] }
  0x24   : > { %492 = vadd.xlane.f32.xlu1 %v491_v26  ;;  %v301_v35 = vld [vmem:[%s287_s12] sm:$0xff] }
  0x25   : > { %1412 = vmatpush.xpose.msk.msra.mxu0 %vm337_vm0, %v317_v6  ;;  %v486_v43 = vmul.f32 %v301_v35, %v301_v35 }
  0x26   : > { %1430 = vmatpush.xpose.msk.msra.mxu1 %vm337_vm0, %v333_v7 }
  0x27   : > { %v488_v44 = vsel %vm337_vm0, %v486_v43, 0.0 }
  0x29   : > { %1413 = vmatpush.xpose.msk.msra.mxu0 %vm337_vm0, %v316_v8 }
  0x2a   : > { %1431 = vmatpush.xpose.msk.msra.mxu1 %vm337_vm0, %v332_v9 }
  0x2d   : > { %1414 = vmatpush.xpose.msk.msra.mxu0 %vm337_vm0, %v315_v10 }
  0x2e   : > { %1432 = vmatpush.xpose.msk.msra.mxu1 %vm337_vm0, %v331_v11 }
  0x31   : > { %1415 = vmatpush.xpose.msk.msra.mxu0 %vm337_vm0, %v314_v12 }
  0x32   : > { %1433 = vmatpush.xpose.msk.msra.mxu1 %vm337_vm0, %v330_v13 }
  0x35   : > { %1416 = vmatpush.xpose.msk.msra.mxu0 %vm337_vm0, %v313_v14 }
  0x36   : > { %1434 = vmatpush.xpose.msk.msra.mxu1 %vm337_vm0, %v329_v15 }
  0x39   : > { %1417 = vmatpush.xpose.msk.msra.mxu0 %vm337_vm0, %v312_v16 }
  0x3a   : > { %1435 = vmatpush.xpose.msk.msra.mxu1 %vm337_vm0, %v328_v17 }
  0x3d   : > { %1418 = vmatpush.xpose.msk.msra.mxu0 %vm337_vm0, %v311_v18 }
  0x3e   : > { %1436 = vmatpush.xpose.msk.msra.mxu1 %vm337_vm0, %v327_v19 }
  0x41   : > { %1419 = vmatpush.xpose.msk.msra.mxu0 %vm337_vm0, %v310_v20 }
  0x42   : > { %1437 = vmatpush.xpose.msk.msra.mxu1 %vm337_vm0, %v326_v21 }
  0x45   : > { %1420 = vmatpush.xpose.msk.msra.mxu0 %vm337_vm0, %v309_v24 }
  0x46   : > { %1438 = vmatpush.xpose.msk.msra.mxu1 %vm337_vm0, %v325_v25 }
  0x49   : > { %1421 = vmatpush.xpose.msk.msra.mxu0 %vm337_vm0, %v308_v27  ;;  %v1173_v27 = vlaneseq }
  0x4a   : > { %1439 = vmatpush.xpose.msk.msra.mxu1 %vm337_vm0, %v324_v28 }
  0x4b   : > { %vm1175_vm3 = vcmp.lt.s32.totalorder %v1173_v27, 256 }
  0x4d   : > { %1422 = vmatpush.xpose.msk.msra.mxu0 %vm337_vm0, %v307_v29 }
  0x4e   : > { %1440 = vmatpush.xpose.msk.msra.mxu1 %vm337_vm0, %v323_v30 }
  0x51   : > { %1423 = vmatpush.xpose.msk.msra.mxu0 %vm337_vm0, %v306_v31 }
  0x52   : > { %1441 = vmatpush.xpose.msk.msra.mxu1 %vm337_vm0, %v322_v32 }
  0x55   : > { %1424 = vmatpush.xpose.msk.msra.mxu0 %vm337_vm0, %v305_v33 }
  0x56   : > { %1442 = vmatpush.xpose.msk.msra.mxu1 %vm337_vm0, %v321_v34 }
  0x58   : > { %1425 = vmatmul.msk.f32.vlgmr.msra.gmra.mxu0 %vm337_vm0, %v301_v35 }
  0x59   : > { %1443 = vmatmul.msk.f32.vlgmr.msra.gmra.mxu1 %vm337_vm0, %v301_v35 }
  0x60   : > { %1426 = vmatmul.msk.f32.gmra.mxu0 %vm337_vm0, %v302_v22 }
  0x61   : > { %1444 = vmatmul.msk.f32.gmra.mxu1 %vm337_vm0, %v302_v22 }
  0x97   : > { %v493_v52 = vpop.xlane.xlu1 %492 }
  0x98   : > { %v495_v54 = vmul.f32 0.088388346, %v493_v52 }
  0xd5   : > { %v457_v36 = vpop.f32.mrf.mxu0 }
  0xd6   : > { %v480_v37 = vpop.f32.mrf.mxu1 }
  0xd7   : > { %v496_v40 = vmax.f32 %v457_v36, %v480_v37 }
  0xdd   : > { %v460_v38 = vpop.f32.mrf.mxu0 }
  0xde   : > { %v483_v39 = vpop.f32.mrf.mxu1  ;;  %v510_v56 = vsub.f32 %v460_v38, %v495_v54 }
  0xdf   : > { %v497_v41 = vmax.f32 %v460_v38, %v483_v39  ;;  %v511_v57 = vsub.f32 %v483_v39, %v495_v54  ;;  %v1923_v38 = vld [vmem:[%s292_s18] sm:$0xff]  ;;  %v1925_v39 = vld [vmem:[%s292_s18 + $0x8] sm:$0xff] }
  0xe0   : > { %703 = vmatpush.msrb.mxu0 %v1923_v38  ;;  %976 = vmatpush.msrb.mxu1 %v1925_v39 }
  0xe1   : > { %v498_v42 = vmax.f32 %v496_v40, %v497_v41  ;;  %1518 = vmatpush.msra.mxu2 %v1923_v38  ;;  %1519 = vmatpush.msra.mxu3 %v1925_v39 }
  0xe3   : > { %499 = vmax.xlane.f32.xlu0 %v498_v42 }
  0xeb   : > { %489 = vadd.xlane.f32.xlu0 %v488_v44 }
 0x156   : > { %v500_v45 = vpop.xlane.xlu0 %499 }
 0x157   : > { %v501_v46 = vrot.slane %v500_v45, 4 }
 0x159   : > { %v502_v47 = vmax.f32 %v500_v45, %v501_v46 }
 0x15b   : > { %v503_v48 = vrot.slane %v502_v47, 2 }
 0x15d   : > { %v504_v49 = vmax.f32 %v502_v47, %v503_v48 }
 0x15e   : > { %v490_v53 = vpop.xlane.xlu0 %489 }
 0x15f   : > { %v505_v50 = vrot.slane %v504_v49, 1  ;;  %v494_v55 = vmul.f32 0.088388346, %v490_v53 }
 0x161   : > { %v506_v51 = vmax.f32 %v504_v49, %v505_v50  ;;  %v508_v58 = vsub.f32 %v457_v36, %v494_v55  ;;  %v509_v59 = vsub.f32 %v480_v37, %v494_v55 }
 0x163   : > { %1520 = vpush %v506_v51 }
 0x194   : > { %s1521_s10 = spop %1520 }
 0x195   : > { %v512_v60 = vstv %s1521_s10  ;;  %s1227_s10 = sshll.u32 %s1914_s14, 4  ;;  %s1228_s10 = int_to_ptr.vmem [resolvable:$true] %s1227_s10 }
 0x196   : > { %v513_v61 = vsub.f32 %v508_v58, %v512_v60  ;;  %v514_v62 = vsub.f32 %v509_v59, %v512_v60  ;;  %v515_v63 = vsub.f32 %v510_v56, %v512_v60  ;;  %v516_v0 = vsub.f32 %v511_v57, %v512_v60  ;;  %526 = vst.msk [vmem:[%s295_s9] sm:$0x1] %vm525_vm1, %v512_v60  ;;  %s1226_s9 = scalar_lea.hbm %s2187_s5, %s1511_s15 }
 0x197   : > { %s1229_s13 = sshll.u32 %s1226_s9, 4  ;;  %s1230_s13 = int_to_ptr.hbm [resolvable:$true] %s1229_s13 }
 0x198   : > { %v517_v1 = vmul.f32 1.442695, %v513_v61  ;;  %v519_v2 = vmul.f32 1.442695, %v514_v62  ;;  %v521_v3 = vmul.f32 1.442695, %v515_v63 }
 0x199   : > { %v523_v4 = vmul.f32 1.442695, %v516_v0  ;;  %s1593_s17 = sshra.s32 %s1230_s13, 4  ;;  %s1594_s17 = int_to_ptr.hbm [resolvable:$true] %s1593_s17 }
 0x19a   : > { %1571 = vpow2.f32 %v517_v1  ;;  %s1595_s18 = scalar_lea.hbm %s1594_s17, 4  ;;  %p1600_p0 = scmp.lt.s32.totalorder %s1594_s17, %s2187_s5 }
 0x19b   : > { %1573 = vpow2.f32 %v519_v2  ;;  %p1596_p11 = scmp.ne.s32.totalorder %s1594_s17, %s1595_s18  ;;  %p1601_p1 = scmp.lt.s32.totalorder %s1599_s26, %s1595_s18 }
 0x19c   : > { %1575 = vpow2.f32 %v521_v3 }
 0x19d   : > { %1577 = vpow2.f32 %v523_v4  ;;  %p1597_p12 = pnand %p1596_p11, %p1752_p5  ;;  %p1602_p2 = por %p1601_p1, %p1600_p0 }
 0x19f   : > { %p1598_p13 = pneg %p1597_p12 }
 0x1a0   : > { %v1572_v5 = vpop.eup %1571 }
 0x1a1   : > { %v1574_v6 = vpop.eup %1573  ;;  %v1138_v7 = vrot.slane %v1572_v5, 4  ;;  %527 = vxpose.xlu1.b32.start.end [1/1] (short) %v1572_v5, 128  ;;  %p1603_p3 = pnand %p1602_p2, %p1598_p13 }
 0x1a2   : > { %v1576_v8 = vpop.eup %1575  ;;  %v1144_v9 = vrot.slane %v1574_v6, 4 }
 0x1a3   : > { %v1578_v10 = vpop.eup %1577  ;;  %v1150_v11 = vrot.slane %v1576_v8, 4  ;;  %801 = vxpose.xlu2.b32.start.end [1/1] (short) %v1576_v8, 128  ;;  %v1139_v12 = vadd.f32 %v1572_v5, %v1138_v7 }
 0x1a4   : > { %v1145_v13 = vadd.f32 %v1574_v6, %v1144_v9  ;;  %v1156_v14 = vrot.slane %v1578_v10, 4  ;;  %833 = vxpose.xlu0.b32.start.end [1/1] (short) %v1578_v10, 128 }
 0x1a5   : > { %v1140_v15 = vrot.slane %v1139_v12, 2  ;;  %v1151_v16 = vadd.f32 %v1576_v8, %v1150_v11 }
 0x1a6   : > { %v1157_v17 = vadd.f32 %v1578_v10, %v1156_v14  ;;  %v1146_v18 = vrot.slane %v1145_v13, 2 }
 0x1a7   : > { %v1141_v19 = vadd.f32 %v1140_v15, %v1139_v12  ;;  %v1152_v20 = vrot.slane %v1151_v16, 2 }
 0x1a8   : > { %v1147_v21 = vadd.f32 %v1146_v18, %v1145_v13  ;;  %v1158_v22 = vrot.slane %v1157_v17, 2 }
 0x1a9   : > { %v1153_v23 = vadd.f32 %v1152_v20, %v1151_v16  ;;  %v1142_v24 = vrot.slane %v1141_v19, 1 }
 0x1aa   : > { %v1148_v25 = vrot.slane %v1147_v21, 1  ;;  %v1159_v26 = vadd.f32 %v1158_v22, %v1157_v17 }
 0x1ab   : > { %v1154_v29 = vrot.slane %v1153_v23, 1  ;;  %v1143_v31 = vadd.f32 %v1142_v24, %v1141_v19 }
 0x1ac   : > { %v1149_v28 = vadd.f32 %v1148_v25, %v1147_v21  ;;  %v1160_v30 = vrot.slane %v1159_v26, 1 }
 0x1ad   : > { %v1155_v34 = vadd.f32 %v1154_v29, %v1153_v23 }
 0x1ae   : > { %v1161_v32 = vadd.f32 %v1160_v30, %v1159_v26  ;;  %v1166_v33 = vrot.slane %v1149_v28, 7 }
 0x1b0   : > { %v1167_v35 = vrot.slane %v1161_v32, 7  ;;  %v1169_v36 = vsel %vm1168_vm2, %v1143_v31, %v1166_v33 }
 0x1b1   : > { %1177 = vst.msk [vmem:[%s1914_s14] sm:$0x3] %vm1175_vm3, %v1169_v36 }
 0x1b2   : > { %v1170_v37 = vsel %vm1168_vm2, %v1155_v34, %v1167_v35 }
 0x1b3   : > { %1178 = vst.msk [vmem:[%s1914_s14 + $0x2] sm:$0x3] %vm1175_vm3, %v1170_v37 }
 0x223   : > { %559 = vxpose.xlu2.b32.start.end [1/1] (short) %v1574_v6, 128 }
 0x23c   : > { %v817_v40 = vpop.trf.xlu2 }
 0x23d   : > { %1477 = vmatmul.msk.f32.vlgmr.msrb.gmra.mxu1 %vm591_vm4, %v817_v40 }
 0x244   : > { %v818_v41 = vpop.trf.xlu2 }
 0x245   : > { %v543_v42 = vpop.trf.xlu1  ;;  %1478 = vmatmul.msk.f32.gmra.mxu1 %vm591_vm4, %v818_v41 }
 0x246   : > { %1445 = vmatmul.msk.f32.vlgmr.msrb.gmra.mxu0 %vm591_vm4, %v543_v42 }
 0x248   : > { %v849_v2 = vpop.trf.xlu0 }
 0x24c   : > { %v819_v43 = vpop.trf.xlu2 }
 0x24d   : > { %v544_v44 = vpop.trf.xlu1  ;;  %1479 = vmatmul.msk.f32.gmra.mxu1 %vm591_vm4, %v819_v43 }
 0x24e   : > { %1446 = vmatmul.msk.f32.gmra.mxu0 %vm591_vm4, %v544_v44 }
 0x250   : > { %v850_v5 = vpop.trf.xlu0 }
 0x254   : > { %v820_v45 = vpop.trf.xlu2 }
 0x255   : > { %v545_v46 = vpop.trf.xlu1  ;;  %1480 = vmatmul.msk.f32.gmra.mxu1 %vm591_vm4, %v820_v45 }
 0x256   : > { %1447 = vmatmul.msk.f32.gmra.mxu0 %vm591_vm4, %v545_v46 }
 0x258   : > { %v851_v8 = vpop.trf.xlu0 }
 0x25c   : > { %v821_v47 = vpop.trf.xlu2 }
 0x25d   : > { %v546_v48 = vpop.trf.xlu1  ;;  %1481 = vmatmul.msk.f32.gmra.mxu1 %vm591_vm4, %v821_v47 }
 0x25e   : > { %1448 = vmatmul.msk.f32.gmra.mxu0 %vm591_vm4, %v546_v48 }
 0x260   : > { %v852_v12 = vpop.trf.xlu0 }
 0x264   : > { %v822_v49 = vpop.trf.xlu2 }
 0x265   : > { %v547_v50 = vpop.trf.xlu1  ;;  %1482 = vmatmul.msk.f32.gmra.mxu1 %vm591_vm4, %v822_v49 }
 0x266   : > { %1449 = vmatmul.msk.f32.gmra.mxu0 %vm591_vm4, %v547_v50 }
 0x268   : > { %v853_v17 = vpop.trf.xlu0 }
 0x26c   : > { %v823_v51 = vpop.trf.xlu2 }
 0x26d   : > { %v548_v52 = vpop.trf.xlu1  ;;  %1483 = vmatmul.msk.f32.gmra.mxu1 %vm591_vm4, %v823_v51 }
 0x26e   : > { %1450 = vmatmul.msk.f32.gmra.mxu0 %vm591_vm4, %v548_v52 }
 0x270   : > { %v854_v21 = vpop.trf.xlu0 }
 0x274   : > { %v824_v53 = vpop.trf.xlu2 }
 0x275   : > { %v549_v54 = vpop.trf.xlu1  ;;  %1484 = vmatmul.msk.f32.gmra.mxu1 %vm591_vm4, %v824_v53 }
 0x276   : > { %1451 = vmatmul.msk.f32.gmra.mxu0 %vm591_vm4, %v549_v54 }
 0x278   : > { %v855_v25 = vpop.trf.xlu0 }
 0x27c   : > { %v825_v55 = vpop.trf.xlu2 }
 0x27d   : > { %v550_v56 = vpop.trf.xlu1  ;;  %1485 = vmatmul.msk.f32.gmra.mxu1 %vm591_vm4, %v825_v55 }
 0x27e   : > { %1452 = vmatmul.msk.f32.gmra.mxu0 %vm591_vm4, %v550_v56 }
 0x280   : > { %v856_v30 = vpop.trf.xlu0 }
 0x284   : > { %v826_v57 = vpop.trf.xlu2 }
 0x285   : > { %v551_v58 = vpop.trf.xlu1  ;;  %1486 = vmatmul.msk.f32.gmra.mxu1 %vm591_vm4, %v826_v57 }
 0x286   : > { %1453 = vmatmul.msk.f32.gmra.mxu0 %vm591_vm4, %v551_v58 }
 0x288   : > { %v857_v36 = vpop.trf.xlu0 }
 0x28c   : > { %v827_v59 = vpop.trf.xlu2 }
 0x28d   : > { %v552_v60 = vpop.trf.xlu1  ;;  %1487 = vmatmul.msk.f32.gmra.mxu1 %vm591_vm4, %v827_v59 }
 0x28e   : > { %1454 = vmatmul.msk.f32.gmra.mxu0 %vm591_vm4, %v552_v60 }
 0x290   : > { %v858_v42 = vpop.trf.xlu0 }
 0x294   : > { %v828_v61 = vpop.trf.xlu2 }
 0x295   : > { %v553_v62 = vpop.trf.xlu1  ;;  %1488 = vmatmul.msk.f32.vlgmr.msra.gmra.mxu3 %vm591_vm4, %v828_v61 }
 0x296   : > { %1455 = vmatmul.msk.f32.gmra.mxu0 %vm591_vm4, %v553_v62 }
 0x298   : > { %v859_v46 = vpop.trf.xlu0 }
 0x29c   : > { %v829_v63 = vpop.trf.xlu2 }
 0x29d   : > { %v554_v0 = vpop.trf.xlu1  ;;  %1489 = vmatmul.msk.f32.gmra.mxu3 %vm591_vm4, %v829_v63 }
 0x29e   : > { %1456 = vmatmul.msk.f32.vlgmr.msra.gmra.mxu2 %vm591_vm4, %v554_v0 }
 0x2a0   : > { %v860_v51 = vpop.trf.xlu0 }
 0x2a4   : > { %v830_v1 = vpop.trf.xlu2 }
 0x2a5   : > { %v555_v3 = vpop.trf.xlu1  ;;  %1490 = vmatmul.msk.f32.gmra.mxu3 %vm591_vm4, %v830_v1 }
 0x2a6   : > { %1457 = vmatmul.msk.f32.gmra.mxu2 %vm591_vm4, %v555_v3 }
 0x2a8   : > { %v861_v56 = vpop.trf.xlu0 }
 0x2ac   : > { %v831_v4 = vpop.trf.xlu2 }
 0x2ad   : > { %v556_v6 = vpop.trf.xlu1  ;;  %1491 = vmatmul.msk.f32.gmra.mxu3 %vm591_vm4, %v831_v4 }
 0x2ae   : > { %1458 = vmatmul.msk.f32.gmra.mxu2 %vm591_vm4, %v556_v6 }
 0x2b0   : > { %v862_v59 = vpop.trf.xlu0 }
 0x2b4   : > { %v832_v7 = vpop.trf.xlu2 }
 0x2b5   : > { %v557_v9 = vpop.trf.xlu1  ;;  %1492 = vmatmul.msk.f32.gmra.mxu3 %vm591_vm4, %v832_v7 }
 0x2b6   : > { %1459 = vmatmul.msk.f32.gmra.mxu2 %vm591_vm4, %v557_v9 }
 0x2b8   : > { %v863_v0 = vpop.trf.xlu0 }
 0x2ba   : > { %v978_v10 = vpop.f32.mrf.mxu1 }
 0x2bb   : > { %1106 = vst.msk [vmem:[%s1966_s28 + $0x100] sm:$0xff] %vm337_vm0, %v978_v10 }
 0x2bc   : > { %v575_v11 = vpop.trf.xlu2 }
 0x2bd   : > { %v558_v13 = vpop.trf.xlu1  ;;  %1493 = vmatmul.msk.f32.gmra.mxu3 %vm591_vm4, %v849_v2 }
 0x2be   : > { %1460 = vmatmul.msk.f32.gmra.mxu2 %vm591_vm4, %v558_v13 }
 0x2c2   : > { %v981_v14 = vpop.f32.mrf.mxu1 }
 0x2c3   : > { %v705_v15 = vpop.f32.mrf.mxu0  ;;  %1107 = vst.msk [vmem:[%s1966_s28 + $0x108] sm:$0xff] %vm337_vm0, %v981_v14 }
 0x2c4   : > { %1074 = vst.msk [vmem:[%s1966_s28] sm:$0xff] %vm337_vm0, %v705_v15  ;;  %v576_v16 = vpop.trf.xlu2 }
 0x2c5   : > { %1494 = vmatmul.msk.f32.gmra.mxu3 %vm591_vm4, %v850_v5  ;;  %v864_v5 = vpop.trf.xlu0 }
 0x2c6   : > { %1461 = vmatmul.msk.f32.gmra.mxu2 %vm591_vm4, %v575_v11 }
 0x2ca   : > { %v984_v18 = vpop.f32.mrf.mxu1 }
 0x2cb   : > { %v708_v19 = vpop.f32.mrf.mxu0  ;;  %1108 = vst.msk [vmem:[%s1966_s28 + $0x110] sm:$0xff] %vm337_vm0, %v984_v18 }
 0x2cc   : > { %1075 = vst.msk [vmem:[%s1966_s28 + $0x8] sm:$0xff] %vm337_vm0, %v708_v19  ;;  %v577_v20 = vpop.trf.xlu2 }
 0x2cd   : > { %1495 = vmatmul.msk.f32.gmra.mxu3 %vm591_vm4, %v851_v8 }
 0x2ce   : > { %1462 = vmatmul.msk.f32.gmra.mxu2 %vm591_vm4, %v576_v16 }
 0x2d2   : > { %v987_v22 = vpop.f32.mrf.mxu1 }
 0x2d3   : > { %v711_v23 = vpop.f32.mrf.mxu0  ;;  %1109 = vst.msk [vmem:[%s1966_s28 + $0x118] sm:$0xff] %vm337_vm0, %v987_v22 }
 0x2d4   : > { %1076 = vst.msk [vmem:[%s1966_s28 + $0x10] sm:$0xff] %vm337_vm0, %v711_v23  ;;  %v578_v24 = vpop.trf.xlu2 }
 0x2d5   : > { %1496 = vmatmul.msk.f32.gmra.mxu3 %vm591_vm4, %v852_v12 }
 0x2d6   : > { %1463 = vmatmul.msk.f32.gmra.mxu2 %vm591_vm4, %v577_v20 }
 0x2da   : > { %v990_v26 = vpop.f32.mrf.mxu1 }
 0x2db   : > { %v714_v27 = vpop.f32.mrf.mxu0  ;;  %1110 = vst.msk [vmem:[%s1966_s28 + $0x120] sm:$0xff] %vm337_vm0, %v990_v26 }
 0x2dc   : > { %1077 = vst.msk [vmem:[%s1966_s28 + $0x18] sm:$0xff] %vm337_vm0, %v714_v27  ;;  %v579_v28 = vpop.trf.xlu2 }
 0x2dd   : > { %1497 = vmatmul.msk.f32.gmra.mxu3 %vm591_vm4, %v853_v17 }
 0x2de   : > { %1464 = vmatmul.msk.f32.gmra.mxu2 %vm591_vm4, %v578_v24 }
 0x2e2   : > { %v993_v29 = vpop.f32.mrf.mxu1 }
 0x2e3   : > { %v717_v31 = vpop.f32.mrf.mxu0  ;;  %1111 = vst.msk [vmem:[%s1966_s28 + $0x128] sm:$0xff] %vm337_vm0, %v993_v29 }
 0x2e4   : > { %1078 = vst.msk [vmem:[%s1966_s28 + $0x20] sm:$0xff] %vm337_vm0, %v717_v31  ;;  %v580_v32 = vpop.trf.xlu2 }
 0x2e5   : > { %1498 = vmatmul.msk.f32.gmra.mxu3 %vm591_vm4, %v854_v21 }
 0x2e6   : > { %1465 = vmatmul.msk.f32.gmra.mxu2 %vm591_vm4, %v579_v28 }
 0x2ea   : > { %v996_v33 = vpop.f32.mrf.mxu1 }
 0x2eb   : > { %v720_v34 = vpop.f32.mrf.mxu0  ;;  %1112 = vst.msk [vmem:[%s1966_s28 + $0x130] sm:$0xff] %vm337_vm0, %v996_v33 }
 0x2ec   : > { %1079 = vst.msk [vmem:[%s1966_s28 + $0x28] sm:$0xff] %vm337_vm0, %v720_v34  ;;  %v581_v35 = vpop.trf.xlu2 }
 0x2ed   : > { %1499 = vmatmul.msk.f32.gmra.mxu3 %vm591_vm4, %v855_v25 }
 0x2ee   : > { %1466 = vmatmul.msk.f32.gmra.mxu2 %vm591_vm4, %v580_v32 }
 0x2f2   : > { %v999_v37 = vpop.f32.mrf.mxu1 }
 0x2f3   : > { %v723_v40 = vpop.f32.mrf.mxu0  ;;  %1113 = vst.msk [vmem:[%s1966_s28 + $0x138] sm:$0xff] %vm337_vm0, %v999_v37 }
 0x2f4   : > { %1080 = vst.msk [vmem:[%s1966_s28 + $0x30] sm:$0xff] %vm337_vm0, %v723_v40  ;;  %v582_v41 = vpop.trf.xlu2 }
 0x2f5   : > { %1500 = vmatmul.msk.f32.gmra.mxu3 %vm591_vm4, %v856_v30 }
 0x2f6   : > { %1467 = vmatmul.msk.f32.gmra.mxu2 %vm591_vm4, %v581_v35 }
 0x2fa   : > { %v1002_v43 = vpop.f32.mrf.mxu1 }
 0x2fb   : > { %v726_v44 = vpop.f32.mrf.mxu0  ;;  %1114 = vst.msk [vmem:[%s1966_s28 + $0x140] sm:$0xff] %vm337_vm0, %v1002_v43 }
 0x2fc   : > { %1081 = vst.msk [vmem:[%s1966_s28 + $0x38] sm:$0xff] %vm337_vm0, %v726_v44  ;;  %v583_v45 = vpop.trf.xlu2 }
 0x2fd   : > { %1501 = vmatmul.msk.f32.gmra.mxu3 %vm591_vm4, %v857_v36 }
 0x2fe   : > { %1468 = vmatmul.msk.f32.gmra.mxu2 %vm591_vm4, %v582_v41 }
 0x302   : > { %v1005_v47 = vpop.f32.mrf.mxu1 }
 0x303   : > { %v729_v48 = vpop.f32.mrf.mxu0  ;;  %1115 = vst.msk [vmem:[%s1966_s28 + $0x148] sm:$0xff] %vm337_vm0, %v1005_v47 }
 0x304   : > { %1082 = vst.msk [vmem:[%s1966_s28 + $0x40] sm:$0xff] %vm337_vm0, %v729_v48  ;;  %v584_v49 = vpop.trf.xlu2 }
 0x305   : > { %1502 = vmatmul.msk.f32.gmra.mxu3 %vm591_vm4, %v858_v42 }
 0x306   : > { %1469 = vmatmul.msk.f32.gmra.mxu2 %vm591_vm4, %v583_v45 }
 0x30a   : > { %v1008_v50 = vpop.f32.mrf.mxu1 }
 0x30b   : > { %v732_v52 = vpop.f32.mrf.mxu0  ;;  %1116 = vst.msk [vmem:[%s1966_s28 + $0x150] sm:$0xff] %vm337_vm0, %v1008_v50 }
 0x30c   : > { %1083 = vst.msk [vmem:[%s1966_s28 + $0x48] sm:$0xff] %vm337_vm0, %v732_v52  ;;  %v585_v53 = vpop.trf.xlu2 }
 0x30d   : > { %1503 = vmatmul.msk.f32.gmra.mxu3 %vm591_vm4, %v859_v46 }
 0x30e   : > { %1470 = vmatmul.msk.f32.gmra.mxu2 %vm591_vm4, %v584_v49 }
 0x313   : > { %v735_v54 = vpop.f32.mrf.mxu0 }
 0x314   : > { %1084 = vst.msk [vmem:[%s1966_s28 + $0x50] sm:$0xff] %vm337_vm0, %v735_v54  ;;  %v586_v55 = vpop.trf.xlu2 }
 0x315   : > { %1504 = vmatmul.msk.f32.gmra.mxu3 %vm591_vm4, %v860_v51 }
 0x316   : > { %1471 = vmatmul.msk.f32.gmra.mxu2 %vm591_vm4, %v585_v53 }
 0x318   : > { %v1011_v57 = vpop.f32.mrf.mxu3 }
 0x319   : > { %1117 = vst.msk [vmem:[%s1966_s28 + $0x158] sm:$0xff] %vm337_vm0, %v1011_v57 }
 0x31c   : > { %v587_v58 = vpop.trf.xlu2 }
 0x31d   : > { %1505 = vmatmul.msk.f32.gmra.mxu3 %vm591_vm4, %v861_v56 }
 0x31e   : > { %1472 = vmatmul.msk.f32.gmra.mxu2 %vm591_vm4, %v586_v55 }
 0x320   : > { %v1014_v60 = vpop.f32.mrf.mxu3 }
 0x321   : > { %v738_v61 = vpop.f32.mrf.mxu2  ;;  %1118 = vst.msk [vmem:[%s1966_s28 + $0x160] sm:$0xff] %vm337_vm0, %v1014_v60 }
 0x322   : > { %1085 = vst.msk [vmem:[%s1966_s28 + $0x58] sm:$0xff] %vm337_vm0, %v738_v61 }
 0x324   : > { %v588_v62 = vpop.trf.xlu2 }
 0x325   : > { %1506 = vmatmul.msk.f32.gmra.mxu3 %vm591_vm4, %v862_v59 }
 0x326   : > { %1473 = vmatmul.msk.f32.gmra.mxu2 %vm591_vm4, %v587_v58 }
 0x328   : > { %v1017_v63 = vpop.f32.mrf.mxu3 }
 0x329   : > { %v741_v1 = vpop.f32.mrf.mxu2  ;;  %1119 = vst.msk [vmem:[%s1966_s28 + $0x168] sm:$0xff] %vm337_vm0, %v1017_v63 }
 0x32a   : > { %1086 = vst.msk [vmem:[%s1966_s28 + $0x60] sm:$0xff] %vm337_vm0, %v741_v1 }
 0x32c   : > { %v589_v4 = vpop.trf.xlu2 }
 0x32d   : > { %1507 = vmatmul.msk.f32.gmra.mxu3 %vm591_vm4, %v863_v0 }
 0x32e   : > { %1474 = vmatmul.msk.f32.gmra.mxu2 %vm591_vm4, %v588_v62 }
 0x330   : > { %v1020_v2 = vpop.f32.mrf.mxu3 }
 0x331   : > { %v744_v3 = vpop.f32.mrf.mxu2  ;;  %1120 = vst.msk [vmem:[%s1966_s28 + $0x170] sm:$0xff] %vm337_vm0, %v1020_v2 }
 0x332   : > { %1087 = vst.msk [vmem:[%s1966_s28 + $0x68] sm:$0xff] %vm337_vm0, %v744_v3 }
 0x334   : > { %v590_v8 = vpop.trf.xlu2 }
 0x335   : > { %1508 = vmatmul.msk.f32.gmra.mxu3 %vm591_vm4, %v864_v5 }
 0x336   : > { %1475 = vmatmul.msk.f32.gmra.mxu2 %vm591_vm4, %v589_v4 }
 0x338   : > { %v1023_v6 = vpop.f32.mrf.mxu3 }
 0x339   : > { %v747_v7 = vpop.f32.mrf.mxu2  ;;  %1121 = vst.msk [vmem:[%s1966_s28 + $0x178] sm:$0xff] %vm337_vm0, %v1023_v6 }
 0x33a   : > { %1088 = vst.msk [vmem:[%s1966_s28 + $0x70] sm:$0xff] %vm337_vm0, %v747_v7 }
 0x33e   : > { %1476 = vmatmul.msk.f32.gmra.mxu2 %vm591_vm4, %v590_v8 }
 0x340   : > { %v1026_v9 = vpop.f32.mrf.mxu3 }
 0x341   : > { %v750_v10 = vpop.f32.mrf.mxu2  ;;  %1122 = vst.msk [vmem:[%s1966_s28 + $0x180] sm:$0xff] %vm337_vm0, %v1026_v9 }
 0x342   : > { %1089 = vst.msk [vmem:[%s1966_s28 + $0x78] sm:$0xff] %vm337_vm0, %v750_v10 }
 0x343   : > { %1606 = shalt.err (!%p1603_p3)
}
 0x344   : > { %s1675_s14 = smov 32   ;;  %s1676_s15 = smov 2   ;;  %v1179_v27 = vsel %vm337_vm0, %v1923_v38, 0.0  ;;  %v1186_v29 = vsel %vm337_vm0, %v1925_v39, 0.0  ;;  %vm1193_vm5 = vcmask 253952  }
 0x345   : > { %1522 = dma.vmem_to_hbm [thread:$0]  (%p1752_p5), %s1228_s10, 64, %s1230_s13, %s1205_s16, %s1675_s14, %s1675_s14, %s1676_s15   ;;  %v1180_v31 = vrot.slane %v1179_v27, 4  ;;  %v1187_v32 = vrot.slane %v1186_v29, 4 }
 0x346   : > { %s1402_s0 = sshll.u32 %s1911_s11, 1  ;;  %s1512_s1 = sshll.u32 %s1735_s25, 1 }
 0x347   : > { %v1181_v33 = vadd.f32 %v1180_v31, %v1179_v27  ;;  %v1188_v34 = vadd.f32 %v1187_v32, %v1186_v29  ;;  %s1242_s9 = scalar_lea.hbm %s2188_s6, %s1512_s1  ;;  %s282_s10 = scalar_lea.vmem [#allocation4], %s1402_s0 }
 0x348   : > { %v1029_v11 = vpop.f32.mrf.mxu3  ;;  %s1243_s13 = sshll.u32 %s282_s10, 4  ;;  %s1245_s16 = sshll.u32 %s1242_s9, 4  ;;  %s1244_s13 = int_to_ptr.vmem [resolvable:$true] %s1243_s13  ;;  %s1246_s16 = int_to_ptr.hbm [resolvable:$true] %s1245_s16 }
 0x349   : > { %v753_v12 = vpop.f32.mrf.mxu2  ;;  %1123 = vst.msk [vmem:[%s1966_s28 + $0x188] sm:$0xff] %vm337_vm0, %v1029_v11  ;;  %v1182_v38 = vrot.slane %v1181_v33, 2  ;;  %v1189_v39 = vrot.slane %v1188_v34, 2  ;;  %s1210_s25 = scalar_lea.sflag [#allocation5], %s1911_s11  ;;  %s1621_s17 = sshra.s32 %s1246_s16, 4  ;;  %s1622_s17 = int_to_ptr.hbm [resolvable:$true] %s1621_s17 }
 0x34a   : > { %1090 = vst.msk [vmem:[%s1966_s28 + $0x80] sm:$0xff] %vm337_vm0, %v753_v12  ;;  %s1623_s18 = scalar_lea.hbm %s1622_s17, 2  ;;  %s1627_s26 = scalar_lea.hbm %s2188_s6, 4 }
 0x34b   : > { %v1183_v37 = vadd.f32 %v1182_v38, %v1181_v33  ;;  %v1190_v40 = vadd.f32 %v1189_v39, %v1188_v34  ;;  %p1624_p4 = scmp.ne.s32.totalorder %s1622_s17, %s1623_s18  ;;  %p1628_p9 = scmp.lt.s32.totalorder %s1622_s17, %s2188_s6 }
 0x34c   : > { %p1629_p10 = scmp.lt.s32.totalorder %s1627_s26, %s1623_s18 }
 0x34d   : > { %v1184_v43 = vrot.slane %v1183_v37, 1  ;;  %v1191_v44 = vrot.slane %v1190_v40, 1  ;;  %p1625_p7 = pnand %p1624_p4, %p1752_p5 }
 0x34e   : > { %p1630_p11 = por %p1629_p10, %p1628_p9 }
 0x34f   : > { %v1185_v45 = vadd.f32 %v1184_v43, %v1183_v37  ;;  %v1192_v46 = vadd.f32 %v1191_v44, %v1190_v40  ;;  %p1626_p8 = pneg %p1625_p7 }
 0x350   : > { %v1032_v13 = vpop.f32.mrf.mxu3 }
 0x351   : > { %v756_v14 = vpop.f32.mrf.mxu2  ;;  %1124 = vst.msk [vmem:[%s1966_s28 + $0x190] sm:$0xff] %vm337_vm0, %v1032_v13  ;;  %p1631_p12 = pnand %p1630_p11, %p1626_p8 }
 0x352   : > { %1091 = vst.msk [vmem:[%s1966_s28 + $0x88] sm:$0xff] %vm337_vm0, %v756_v14 }
 0x353   : > { %1194 = vst.msk [vmem:[%s282_s10] sm:$0x1] %vm1193_vm5, %v1185_v45 }
 0x354   : > { %1195 = vst.msk [vmem:[%s282_s10 + $0x1] sm:$0x1] %vm1193_vm5, %v1192_v46 }
 0x358   : > { %v1035_v15 = vpop.f32.mrf.mxu3 }
 0x359   : > { %v759_v16 = vpop.f32.mrf.mxu2  ;;  %1125 = vst.msk [vmem:[%s1966_s28 + $0x198] sm:$0xff] %vm337_vm0, %v1035_v15 }
 0x35a   : > { %1092 = vst.msk [vmem:[%s1966_s28 + $0x90] sm:$0xff] %vm337_vm0, %v759_v16 }
 0x360   : > { %v1038_v17 = vpop.f32.mrf.mxu3 }
 0x361   : > { %v762_v18 = vpop.f32.mrf.mxu2  ;;  %1126 = vst.msk [vmem:[%s1966_s28 + $0x1a0] sm:$0xff] %vm337_vm0, %v1038_v17 }
 0x362   : > { %1093 = vst.msk [vmem:[%s1966_s28 + $0x98] sm:$0xff] %vm337_vm0, %v762_v18 }
 0x368   : > { %v1041_v19 = vpop.f32.mrf.mxu3 }
 0x369   : > { %v765_v20 = vpop.f32.mrf.mxu2  ;;  %1127 = vst.msk [vmem:[%s1966_s28 + $0x1a8] sm:$0xff] %vm337_vm0, %v1041_v19 }
 0x36a   : > { %1094 = vst.msk [vmem:[%s1966_s28 + $0xa0] sm:$0xff] %vm337_vm0, %v765_v20 }
 0x370   : > { %v1044_v21 = vpop.f32.mrf.mxu3 }
 0x371   : > { %v768_v22 = vpop.f32.mrf.mxu2  ;;  %1128 = vst.msk [vmem:[%s1966_s28 + $0x1b0] sm:$0xff] %vm337_vm0, %v1044_v21 }
 0x372   : > { %1095 = vst.msk [vmem:[%s1966_s28 + $0xa8] sm:$0xff] %vm337_vm0, %v768_v22 }
 0x378   : > { %v1047_v23 = vpop.f32.mrf.mxu3 }
 0x379   : > { %v771_v24 = vpop.f32.mrf.mxu2  ;;  %1129 = vst.msk [vmem:[%s1966_s28 + $0x1b8] sm:$0xff] %vm337_vm0, %v1047_v23 }
 0x37a   : > { %1096 = vst.msk [vmem:[%s1966_s28 + $0xb0] sm:$0xff] %vm337_vm0, %v771_v24 }
 0x380   : > { %v1050_v25 = vpop.f32.mrf.mxu3 }
 0x381   : > { %v774_v26 = vpop.f32.mrf.mxu2  ;;  %1130 = vst.msk [vmem:[%s1966_s28 + $0x1c0] sm:$0xff] %vm337_vm0, %v1050_v25 }
 0x382   : > { %1097 = vst.msk [vmem:[%s1966_s28 + $0xb8] sm:$0xff] %vm337_vm0, %v774_v26 }
 0x388   : > { %v1053_v28 = vpop.f32.mrf.mxu3 }
 0x389   : > { %v777_v30 = vpop.f32.mrf.mxu2  ;;  %1131 = vst.msk [vmem:[%s1966_s28 + $0x1c8] sm:$0xff] %vm337_vm0, %v1053_v28 }
 0x38a   : > { %1098 = vst.msk [vmem:[%s1966_s28 + $0xc0] sm:$0xff] %vm337_vm0, %v777_v30 }
 0x390   : > { %v1056_v35 = vpop.f32.mrf.mxu3 }
 0x391   : > { %v780_v36 = vpop.f32.mrf.mxu2  ;;  %1132 = vst.msk [vmem:[%s1966_s28 + $0x1d0] sm:$0xff] %vm337_vm0, %v1056_v35 }
 0x392   : > { %1099 = vst.msk [vmem:[%s1966_s28 + $0xc8] sm:$0xff] %vm337_vm0, %v780_v36 }
 0x398   : > { %v1059_v41 = vpop.f32.mrf.mxu3 }
 0x399   : > { %v783_v42 = vpop.f32.mrf.mxu2  ;;  %1133 = vst.msk [vmem:[%s1966_s28 + $0x1d8] sm:$0xff] %vm337_vm0, %v1059_v41 }
 0x39a   : > { %1100 = vst.msk [vmem:[%s1966_s28 + $0xd0] sm:$0xff] %vm337_vm0, %v783_v42 }
 0x3a0   : > { %v1062_v47 = vpop.f32.mrf.mxu3 }
 0x3a1   : > { %v786_v48 = vpop.f32.mrf.mxu2  ;;  %1134 = vst.msk [vmem:[%s1966_s28 + $0x1e0] sm:$0xff] %vm337_vm0, %v1062_v47 }
 0x3a2   : > { %1101 = vst.msk [vmem:[%s1966_s28 + $0xd8] sm:$0xff] %vm337_vm0, %v786_v48 }
 0x3a3   : > { %1634 = shalt.err (!%p1631_p12)
}
 0x3a4   : > { %s1677_s11 = smov 16   ;;  %s1678_s0 = smov 1  }
 0x3a5   : > { %1523 = dma.vmem_to_hbm [thread:$0]  (%p1752_p5), %s1244_s13, 32, %s1246_s16, %s1210_s25, %s1677_s11, %s1677_s11, %s1678_s0  }
 0x3a8   : > { %v1065_v49 = vpop.f32.mrf.mxu3 }
 0x3a9   : > { %v789_v50 = vpop.f32.mrf.mxu2  ;;  %1135 = vst.msk [vmem:[%s1966_s28 + $0x1e8] sm:$0xff] %vm337_vm0, %v1065_v49 }
 0x3aa   : > { %1102 = vst.msk [vmem:[%s1966_s28 + $0xe0] sm:$0xff] %vm337_vm0, %v789_v50 }
 0x3b0   : > { %v1068_v51 = vpop.f32.mrf.mxu3 }
 0x3b1   : > { %v792_v52 = vpop.f32.mrf.mxu2  ;;  %1136 = vst.msk [vmem:[%s1966_s28 + $0x1f0] sm:$0xff] %vm337_vm0, %v1068_v51 }
 0x3b2   : > { %1103 = vst.msk [vmem:[%s1966_s28 + $0xe8] sm:$0xff] %vm337_vm0, %v792_v52 }
 0x3b8   : > { %v1071_v53 = vpop.f32.mrf.mxu3 }
 0x3b9   : > { %v795_v54 = vpop.f32.mrf.mxu2  ;;  %1137 = vst.msk [vmem:[%s1966_s28 + $0x1f8] sm:$0xff] %vm337_vm0, %v1071_v53 }
 0x3ba   : > { %1104 = vst.msk [vmem:[%s1966_s28 + $0xf0] sm:$0xff] %vm337_vm0, %v795_v54 }
 0x3c1   : > { %v798_v55 = vpop.f32.mrf.mxu2 }
 0x3c2   : > { %1105 = vst.msk [vmem:[%s1966_s28 + $0xf8] sm:$0xff] %vm337_vm0, %v798_v55 }
 0x3c3 PF: > { %p1533_p5 = scmp.ge.s32.totalorder %s1673_s24, 2  ;;  %s1274_s7 = sand.u32 1, %s1661_s21  }
 0x3c4   : > { %s1275_s1 = scalar_lea.sflag [#allocation3], %s1274_s7 }
 0x3c5   : > { %p1527_p13 = pnand %p1533_p5, %p1756_p6 }
 0x3c7   : > { %p1528_p0 = pneg %p1527_p13 }
 0x3c9   : > { %1652 = dma.done.wait (%p1528_p0), %s1275_s1, 64  }
 0x3ca   : > { %1654 = vsyncadd (%p1528_p0), %s1275_s1, 4294967232  ;;  %s1285_s12 = scalar_lea.sflag [#allocation5], %s1274_s7 }
 0x3cb   : > { %1656 = dma.done.wait (%p1528_p0), %s1285_s12, 32  }
 0x3cc   : > { %1658 = vsyncadd (%p1528_p0), %s1285_s12, 4294967264  ;;  %p20_p1 = scmp.ge.s32.totalorder %s1739_s27, 4   ;;  %s2195_s21 = smov %s1665_s22 }
 0x3cd   : > { %s2196_s22 = smov %s1669_s23  ;;  %s2197_s23 = smov %s1750_s30 }
 0x3ce   : > { %s2198_s24 = smov %s1739_s27  ;;  %22 = sbr.rel (!%p20_p1) target bundleno = 8 (0x8), region = 111 }
 0x3d3   :  { %1291 = vsyncpa [#allocation3], 1 }
 0x3d4   :  { %1293 = vsyncpa [#allocation3 + $0x1], 1 }
 0x3d5   :  { %1294 = vsyncpa [#allocation5], 1 }
 0x3d6   :  { %1296 = vsyncpa [#allocation5 + $0x1], 1 }

</bundles_post_ra>
